<compile_context>
chip_gen: v7x
topology: tpu7x:2x2x1
jax: 0.10.0
libtpu: 0.0.40
codegen_flags: <defaults>
</compile_context>

<pallas_src>
import jax
import jax.numpy as jnp
from jax.experimental import pallas as pl
from jax.experimental.pallas import tpu as pltpu

LANE = 128        # TPU lane width
SUBLANE = 8       # f32 sublane quantum
MAX_BLOCK_B = 512 # one big batch tile whenever possible (overhead amortization)


def _round_up(x, m):
    return ((x + m - 1) // m) * m


# ----------------------------- Pallas kernel -------------------------------

def parser_mlp_kernel(wslab_ref, pslab_ref, lslab_ref,
                      w1w_ref, w1p_ref, w1l_ref, b1_ref,
                      w2_ref, b2_ref, out_ref):
    # hidden = [wordemb | posemb | labelemb] @ W1 + b1
    # done as three accumulating MXU matmuls (no concat buffer materialized).
    h = jnp.dot(wslab_ref[...], w1w_ref[...], preferred_element_type=jnp.float32)
    h = h + jnp.dot(pslab_ref[...], w1p_ref[...], preferred_element_type=jnp.float32)
    h = h + jnp.dot(lslab_ref[...], w1l_ref[...], preferred_element_type=jnp.float32)
    h = h + b1_ref[...]
    # cube = hidden ** 3  (VPU elementwise, f32)
    c = h * h * h
    # TODO(synk): nn.Dropout(0.3) has no torch-RNG-compatible equivalent;
    # implemented as identity (eval/inference semantics).
    # logits (lane-padded to 128 columns) = cube @ W2 + b2
    out_ref[...] = jnp.dot(c, w2_ref[...],
                           preferred_element_type=jnp.float32) + b2_ref[...]


def parser_mlp(wslab, pslab, lslab, w1w, w1p, w1l, b1, w2, b2):
    """wslab/pslab/lslab: (B, 6*dim) f32 embedding slabs.
       w1*: (6*dim, Hp) row-blocks of zero-padded W1; b1: (1, Hp);
       w2: (Hp, 128) zero-padded; b2: (1, 128) zero-padded.
       Returns lane-padded logits (B, 128); real logits are [:, :3]."""
    B = wslab.shape[0]
    out_pad = w2.shape[1]

    # One large batch tile when possible; otherwise 512-row tiles.
    block_b = min(MAX_BLOCK_B, _round_up(B, SUBLANE))
    Bp = _round_up(B, block_b)
    if Bp != B:
        pad = ((0, Bp - B), (0, 0))
        wslab = jnp.pad(wslab, pad)
        pslab = jnp.pad(pslab, pad)
        lslab = jnp.pad(lslab, pad)

    grid = (Bp // block_b,)

    def row_tiled(arr):
        # batch-tiled activations: tile rows, full lane dim
        return pl.BlockSpec((block_b, arr.shape[1]), lambda i: (i, 0))

    def resident(arr):
        # grid-invariant weights: same (whole-array) block every step ->
        # stays resident in VMEM, no re-DMA per batch tile
        return pl.BlockSpec(arr.shape, lambda i: (0, 0))

    out = pl.pallas_call(
        parser_mlp_kernel,
        out_shape=jax.ShapeDtypeStruct((Bp, out_pad), jnp.float32),
        grid=grid,
        in_specs=[row_tiled(wslab), row_tiled(pslab), row_tiled(lslab),
                  resident(w1w), resident(w1p), resident(w1l), resident(b1),
                  resident(w2), resident(b2)],
        out_specs=pl.BlockSpec((block_b, out_pad), lambda i: (i, 0)),
        compiler_params=pltpu.CompilerParams(
            dimension_semantics=("parallel",)),
    )(wslab, pslab, lslab, w1w, w1p, w1l, b1, w2, b2)
    return out[:B]


# ------------------------------ model wrapper -------------------------------

class ParserModelPallas:
    def __init__(self, wordvocabsize, posvocabsize, labelvocabsize,
                 worddim, posdim, labeldim, hiddenneurons=200, dropout=0.3,
                 key=None):
        if key is None:
            key = jax.random.PRNGKey(0)
        k = jax.random.split(key, 7)
        inpsize = 6 * worddim + 6 * posdim + 6 * labeldim
        H = hiddenneurons

        # Embedding tables: N(0, 1) like nn.Embedding default.
        self.wordembed = jax.random.normal(k[0], (wordvocabsize, worddim), jnp.float32)
        self.posembed = jax.random.normal(k[1], (posvocabsize, posdim), jnp.float32)
        self.labelembed = jax.random.normal(k[2], (labelvocabsize, labeldim), jnp.float32)

        # Linear layers stored transposed ((in, out)) so the kernel computes
        # x @ W (== torch's x @ W.T). Init like nn.Linear default.
        lim1 = 1.0 / float(inpsize) ** 0.5
        self.w1 = jax.random.uniform(k[3], (inpsize, H), jnp.float32, -lim1, lim1)
        self.b1 = jax.random.uniform(k[4], (1, H), jnp.float32, -lim1, lim1)
        lim2 = 1.0 / float(H) ** 0.5
        self.w2 = jax.random.uniform(k[5], (H, 3), jnp.float32, -lim2, lim2)
        self.b2 = jax.random.uniform(k[6], (1, 3), jnp.float32, -lim2, lim2)

        # ---- kernel-side padded / split weights (built once at init) --------
        Hp = _round_up(H, LANE)   # pad hidden dim to 128 lanes (aligned K for 2nd matmul)
        OUTp = LANE               # pad 3 logits to 128 lanes (unmasked stores)
        w1_pad = jnp.zeros((inpsize, Hp), jnp.float32).at[:, :H].set(self.w1)
        sw, sp = 6 * worddim, 6 * posdim
        self.w1w = w1_pad[:sw]                 # (6*worddim, Hp)
        self.w1p = w1_pad[sw:sw + sp]          # (6*posdim,  Hp)
        self.w1l = w1_pad[sw + sp:]            # (6*labeldim,Hp)
        self.b1p = jnp.zeros((1, Hp), jnp.float32).at[:, :H].set(self.b1)
        self.w2p = jnp.zeros((Hp, OUTp), jnp.float32).at[:H, :3].set(self.w2)
        self.b2p = jnp.zeros((1, OUTp), jnp.float32).at[:, :3].set(self.b2)

    def forward(self, wordid, posid, labelid):
        # Accepts (6,) ids (original torch semantics -> (1, 3) logits) or a
        # batch (B, 6) of parser states -> (B, 3) logits.
        wordid = jnp.atleast_2d(wordid)
        posid = jnp.atleast_2d(posid)
        labelid = jnp.atleast_2d(labelid)
        B = wordid.shape[0]
        # Embedding row gathers + flatten (thin XLA glue, amortized over batch).
        wslab = self.wordembed[wordid].reshape(B, -1)
        pslab = self.posembed[posid].reshape(B, -1)
        lslab = self.labelembed[labelid].reshape(B, -1)
        # Fused MLP (matmuls + cube + matmul) in one Pallas call.
        logits_pad = parser_mlp(wslab, pslab, lslab,
                                self.w1w, self.w1p, self.w1l, self.b1p,
                                self.w2p, self.b2p)
        return logits_pad[:, :3]   # drop zero-padded lanes before use/argmax

    def predict(self, wordid, posid, labelid):
        return jnp.argmax(self.forward(wordid, posid, labelid), axis=-1)


# ---------------------------------- main ------------------------------------

if __name__ == "__main__":
    key = jax.random.PRNGKey(0)
    k_model, k_w, k_p, k_l, k_wb, k_pb, k_lb = jax.random.split(key, 7)

    wordvocabsize, posvocabsize, labelvocabsize = 50, 20, 12
    worddim, posdim, labeldim = 16, 8, 8
    hiddenneurons = 32

    model = ParserModelPallas(wordvocabsize, posvocabsize, labelvocabsize,
                              worddim, posdim, labeldim,
                              hiddenneurons=hiddenneurons, key=k_model)

    def reference(wids, pids, lids):
        B = wids.shape[0]
        joined = jnp.concatenate(
            [model.wordembed[wids].reshape(B, -1),
             model.posembed[pids].reshape(B, -1),
             model.labelembed[lids].reshape(B, -1)], axis=1)
        return jnp.power(joined @ model.w1 + model.b1, 3) @ model.w2 + model.b2

    # ---- single parser state (original torch forward signature: (6,) ids) ----
    wordid = jax.random.randint(k_w, (6,), 0, wordvocabsize, dtype=jnp.int32)
    posid = jax.random.randint(k_p, (6,), 0, posvocabsize, dtype=jnp.int32)
    labelid = jax.random.randint(k_l, (6,), 0, labelvocabsize, dtype=jnp.int32)
    logits1 = jax.block_until_ready(model.forward(wordid, posid, labelid))
    ref1 = reference(wordid[None], posid[None], labelid[None])
    assert logits1.shape == (1, 3)
    assert jnp.allclose(logits1, ref1, atol=1e-4, rtol=1e-4)

    # ---- batched parser states (amortized path) ----
    B = 16
    wordids = jax.random.randint(k_wb, (B, 6), 0, wordvocabsize, dtype=jnp.int32)
    posids = jax.random.randint(k_pb, (B, 6), 0, posvocabsize, dtype=jnp.int32)
    labelids = jax.random.randint(k_lb, (B, 6), 0, labelvocabsize, dtype=jnp.int32)
    logitsB = jax.block_until_ready(model.forward(wordids, posids, labelids))
    refB = reference(wordids, posids, labelids)
    assert logitsB.shape == (B, 3)
    assert jnp.allclose(logitsB, refB, atol=1e-4, rtol=1e-4)

    preds = jax.block_until_ready(model.predict(wordids, posids, labelids))
    assert preds.shape == (B,)

    print("KERNEL_OK")
</pallas_src>

<mosaic_0001>
module attributes {stable_mosaic.version = 11 : i64} {
  func.func @parser_mlp_kernel(%arg0: i32, %arg1: memref<8x96xf32, #tpu.memory_space<vmem>>, %arg2: memref<8x48xf32, #tpu.memory_space<vmem>>, %arg3: memref<8x48xf32, #tpu.memory_space<vmem>>, %arg4: memref<96x128xf32, #tpu.memory_space<vmem>>, %arg5: memref<48x128xf32, #tpu.memory_space<vmem>>, %arg6: memref<48x128xf32, #tpu.memory_space<vmem>>, %arg7: memref<1x128xf32, #tpu.memory_space<vmem>>, %arg8: memref<128x128xf32, #tpu.memory_space<vmem>>, %arg9: memref<1x128xf32, #tpu.memory_space<vmem>>, %arg10: memref<8x128xf32, #tpu.memory_space<vmem>>) attributes {dimension_semantics = [#tpu.dimension_semantics<parallel>], iteration_bounds = array<i64: 1>, scalar_prefetch = 0 : i64, scratch_operands = 0 : i64, tpu.core_type = #tpu.core_type<tc>, window_params = [{transform_indices = @transform_0, window_bounds = array<i64: 8, 96>}, {transform_indices = @transform_1, window_bounds = array<i64: 8, 48>}, {transform_indices = @transform_2, window_bounds = array<i64: 8, 48>}, {pipeline_mode = #tpu.pipeline_mode<synchronous>, transform_indices = @transform_3, window_bounds = array<i64: 96, 128>}, {pipeline_mode = #tpu.pipeline_mode<synchronous>, transform_indices = @transform_4, window_bounds = array<i64: 48, 128>}, {pipeline_mode = #tpu.pipeline_mode<synchronous>, transform_indices = @transform_5, window_bounds = array<i64: 48, 128>}, {pipeline_mode = #tpu.pipeline_mode<synchronous>, transform_indices = @transform_6, window_bounds = array<i64: 1, 128>}, {pipeline_mode = #tpu.pipeline_mode<synchronous>, transform_indices = @transform_7, window_bounds = array<i64: 128, 128>}, {pipeline_mode = #tpu.pipeline_mode<synchronous>, transform_indices = @transform_8, window_bounds = array<i64: 1, 128>}, {transform_indices = @transform_9, window_bounds = array<i64: 8, 128>}]} {
    %c0 = arith.constant 0 : index
    %c0_0 = arith.constant 0 : index
    %0 = vector.load %arg1[%c0, %c0_0] : memref<8x96xf32, #tpu.memory_space<vmem>>, vector<8x96xf32>
    %c0_1 = arith.constant 0 : index
    %c0_2 = arith.constant 0 : index
    %1 = vector.load %arg4[%c0_1, %c0_2] : memref<96x128xf32, #tpu.memory_space<vmem>>, vector<96x128xf32>
    %cst = arith.constant dense<0.000000e+00> : vector<8x128xf32>
    %2 = tpu.matmul %0, %1, %cst {dimension_numbers = #tpu.dot_dimension_numbers<[1], [0], [0], [1], [0, 0, 1, 1], [], []>} : vector<8x96xf32>, vector<96x128xf32>, vector<8x128xf32> -> vector<8x128xf32>
    %c0_3 = arith.constant 0 : index
    %c0_4 = arith.constant 0 : index
    %3 = vector.load %arg2[%c0_3, %c0_4] : memref<8x48xf32, #tpu.memory_space<vmem>>, vector<8x48xf32>
    %c0_5 = arith.constant 0 : index
    %c0_6 = arith.constant 0 : index
    %4 = vector.load %arg5[%c0_5, %c0_6] : memref<48x128xf32, #tpu.memory_space<vmem>>, vector<48x128xf32>
    %cst_7 = arith.constant dense<0.000000e+00> : vector<8x128xf32>
    %5 = tpu.matmul %3, %4, %cst_7 {dimension_numbers = #tpu.dot_dimension_numbers<[1], [0], [0], [1], [0, 0, 1, 1], [], []>} : vector<8x48xf32>, vector<48x128xf32>, vector<8x128xf32> -> vector<8x128xf32>
    %6 = arith.addf %2, %5 : vector<8x128xf32>
    %c0_8 = arith.constant 0 : index
    %c0_9 = arith.constant 0 : index
    %7 = vector.load %arg3[%c0_8, %c0_9] : memref<8x48xf32, #tpu.memory_space<vmem>>, vector<8x48xf32>
    %c0_10 = arith.constant 0 : index
    %c0_11 = arith.constant 0 : index
    %8 = vector.load %arg6[%c0_10, %c0_11] : memref<48x128xf32, #tpu.memory_space<vmem>>, vector<48x128xf32>
    %cst_12 = arith.constant dense<0.000000e+00> : vector<8x128xf32>
    %9 = tpu.matmul %7, %8, %cst_12 {dimension_numbers = #tpu.dot_dimension_numbers<[1], [0], [0], [1], [0, 0, 1, 1], [], []>} : vector<8x48xf32>, vector<48x128xf32>, vector<8x128xf32> -> vector<8x128xf32>
    %10 = arith.addf %6, %9 : vector<8x128xf32>
    %c0_13 = arith.constant 0 : index
    %c0_14 = arith.constant 0 : index
    %11 = vector.load %arg7[%c0_13, %c0_14] : memref<1x128xf32, #tpu.memory_space<vmem>>, vector<1x128xf32>
    %12 = vector.broadcast %11 : vector<1x128xf32> to vector<8x128xf32>
    %13 = arith.addf %10, %12 : vector<8x128xf32>
    %14 = arith.mulf %13, %13 : vector<8x128xf32>
    %15 = arith.mulf %14, %13 : vector<8x128xf32>
    %c0_15 = arith.constant 0 : index
    %c0_16 = arith.constant 0 : index
    %16 = vector.load %arg8[%c0_15, %c0_16] : memref<128x128xf32, #tpu.memory_space<vmem>>, vector<128x128xf32>
    %cst_17 = arith.constant dense<0.000000e+00> : vector<8x128xf32>
    %17 = tpu.matmul %15, %16, %cst_17 {dimension_numbers = #tpu.dot_dimension_numbers<[1], [0], [0], [1], [0, 0, 1, 1], [], []>} : vector<8x128xf32>, vector<128x128xf32>, vector<8x128xf32> -> vector<8x128xf32>
    %c0_18 = arith.constant 0 : index
    %c0_19 = arith.constant 0 : index
    %18 = vector.load %arg9[%c0_18, %c0_19] : memref<1x128xf32, #tpu.memory_space<vmem>>, vector<1x128xf32>
    %19 = vector.broadcast %18 : vector<1x128xf32> to vector<8x128xf32>
    %20 = arith.addf %17, %19 : vector<8x128xf32>
    %c0_20 = arith.constant 0 : index
    %c0_21 = arith.constant 0 : index
    %21 = vector.load %arg10[%c0_20, %c0_21] : memref<8x128xf32, #tpu.memory_space<vmem>>, vector<8x128xf32>
    tpu.vector_store %arg10[%c0_20, %c0_21], %20 {strides = array<i32>} : memref<8x128xf32, #tpu.memory_space<vmem>>, vector<8x128xf32>,
    return
  }
  func.func @transform_0(%arg0: i32) -> (i32, i32) {
    %c0_i32 = arith.constant 0 : i32
    %c0_i32_0 = arith.constant 0 : i32
    return %arg0, %c0_i32 : i32, i32
  }
  func.func @transform_1(%arg0: i32) -> (i32, i32) {
    %c0_i32 = arith.constant 0 : i32
    %c0_i32_0 = arith.constant 0 : i32
    return %arg0, %c0_i32 : i32, i32
  }
  func.func @transform_2(%arg0: i32) -> (i32, i32) {
    %c0_i32 = arith.constant 0 : i32
    %c0_i32_0 = arith.constant 0 : i32
    return %arg0, %c0_i32 : i32, i32
  }
  func.func @transform_3(%arg0: i32) -> (i32, i32) {
    %c0_i32 = arith.constant 0 : i32
    %c0_i32_0 = arith.constant 0 : i32
    %c0_i32_1 = arith.constant 0 : i32
    return %c0_i32, %c0_i32_0 : i32, i32
  }
  func.func @transform_4(%arg0: i32) -> (i32, i32) {
    %c0_i32 = arith.constant 0 : i32
    %c0_i32_0 = arith.constant 0 : i32
    %c0_i32_1 = arith.constant 0 : i32
    return %c0_i32, %c0_i32_0 : i32, i32
  }
  func.func @transform_5(%arg0: i32) -> (i32, i32) {
    %c0_i32 = arith.constant 0 : i32
    %c0_i32_0 = arith.constant 0 : i32
    %c0_i32_1 = arith.constant 0 : i32
    return %c0_i32, %c0_i32_0 : i32, i32
  }
  func.func @transform_6(%arg0: i32) -> (i32, i32) {
    %c0_i32 = arith.constant 0 : i32
    %c0_i32_0 = arith.constant 0 : i32
    %c0_i32_1 = arith.constant 0 : i32
    return %c0_i32, %c0_i32_0 : i32, i32
  }
  func.func @transform_7(%arg0: i32) -> (i32, i32) {
    %c0_i32 = arith.constant 0 : i32
    %c0_i32_0 = arith.constant 0 : i32
    %c0_i32_1 = arith.constant 0 : i32
    return %c0_i32, %c0_i32_0 : i32, i32
  }
  func.func @transform_8(%arg0: i32) -> (i32, i32) {
    %c0_i32 = arith.constant 0 : i32
    %c0_i32_0 = arith.constant 0 : i32
    %c0_i32_1 = arith.constant 0 : i32
    return %c0_i32, %c0_i32_0 : i32, i32
  }
  func.func @transform_9(%arg0: i32) -> (i32, i32) {
    %c0_i32 = arith.constant 0 : i32
    %c0_i32_0 = arith.constant 0 : i32
    return %arg0, %c0_i32 : i32, i32
  }
}

</mosaic_0001>

<bundles_post_ra>
// kernel: tpu_custom_call.1
= control target key start
LH: loop header
LB: loop body
LE: loop exit
PB: predicated region body
PF: predicated region fallthrough
CT: control target
= control target key end

     0   :  { %14 = vsyncpa [#allocation3], 0  ;;  %s1110_s0 = inlined_call_operand.hbm [shape: f32[8,96], index: 0, kind: input, shape index: {}]   ;;  %s1111_s1 = inlined_call_operand.hbm [shape: f32[8,48], index: 1, kind: input, shape index: {}]   ;;  %s1112_s2 = inlined_call_operand.hbm [shape: f32[8,48], index: 2, kind: input, shape index: {}]   ;;  %s1113_s3 = inlined_call_operand.hbm [shape: f32[96,128], index: 3, kind: input, shape index: {}]   ;;  %s1114_s4 = inlined_call_operand.hbm [shape: f32[48,128], index: 4, kind: input, shape index: {}]   ;;  %s1115_s5 = inlined_call_operand.hbm [shape: f32[48,128], index: 5, kind: input, shape index: {}]   ;;  %s1116_s6 = inlined_call_operand.vmem [shape: f32[1,128], index: 6, kind: input, shape index: {}]   ;;  %s1117_s7 = inlined_call_operand.hbm [shape: f32[128,128], index: 7, kind: input, shape index: {}]   ;;  %s1118_s8 = inlined_call_operand.vmem [shape: f32[1,128], index: 8, kind: input, shape index: {}]   ;;  %s1119_s9 = inlined_call_operand.hbm [shape: f32[8,128], index: 9, kind: output, shape index: {}]  }
   0x1   :  { %15 = vsyncpa [#allocation6], 0 }
   0x2   :  { %16 = vsyncpa [#allocation9], 0 }
   0x3   :  { %17 = vsyncpa [#allocation12], 0 }
   0x4   :  { %18 = vsyncpa [#allocation4], 0  ;;  %s893_s30 = smov [#allocation5]   ;;  %s894_s11 = smov [#allocation8]  }
   0x5   :  { %s35_s10 = sshll.u32 %s893_s30, 4  ;;  %s54_s12 = sshll.u32 %s894_s11, 4  ;;  %s36_s10 = int_to_ptr.vmem [resolvable:$true] %s35_s10  ;;  %s956_s12 = int_to_ptr.vmem [resolvable:$true] %s54_s12 }
   0x6   :  { %s707_s15 = scalar_lea.hbm %s1111_s1, 128 }
   0x7   :  { %p708_p0 = scmp.ne.s32.totalorder %s1111_s1, %s707_s15  ;;  %p711_p1 = scmp.lt.u32.totalorder %s707_s15, %s1111_s1 }
   0x9   :  { %p713_p2 = pnand %p711_p1, %p708_p0 }
   0xb   :  { %716 = shalt.err (!%p713_p2)
}
   0xc   :  { %s717_s20 = scalar_lea.vmem %s36_s10, 128  ;;  %p722_p4 = scmp.lt.s32.totalorder %s36_s10, %s36_s10 }
   0xd   :  { %p718_p3 = scmp.ne.s32.totalorder %s36_s10, %s717_s20  ;;  %p723_p5 = scmp.lt.s32.totalorder %s717_s20, %s717_s20 }
   0xf   :  { %p724_p6 = por %p723_p5, %p722_p4 }
  0x11   :  { %p725_p7 = pnand %p724_p6, %p718_p3 }
  0x13   :  { %728 = shalt.err (!%p725_p7)
}
  0x14   :  { %38 = dma.hbm_to_vmem [thread:$0]  %s1111_s1, 128, %s36_s10, [#allocation6]  }
  0x15   :  { %s729_s25 = scalar_lea.hbm %s1113_s3, 1536 }
  0x16   :  { %p730_p8 = scmp.ne.s32.totalorder %s1113_s3, %s729_s25  ;;  %p733_p9 = scmp.lt.u32.totalorder %s729_s25, %s1113_s3 }
  0x18   :  { %p735_p10 = pnand %p733_p9, %p730_p8 }
  0x1a   :  { %738 = shalt.err (!%p735_p10)
}
  0x1b   :  { %s739_s30 = scalar_lea.vmem %s956_s12, 1536  ;;  %p744_p12 = scmp.lt.s32.totalorder %s956_s12, %s956_s12 }
  0x1c   :  { %p740_p11 = scmp.ne.s32.totalorder %s956_s12, %s739_s30  ;;  %p745_p13 = scmp.lt.s32.totalorder %s739_s30, %s739_s30 }
  0x1e   :  { %p746_p0 = por %p745_p13, %p744_p12 }
  0x20   :  { %p747_p1 = pnand %p746_p0, %p740_p11 }
  0x22   :  { %750 = shalt.err (!%p747_p1)
}
  0x23   :  { %s895_s1 = smov 128   ;;  %s896_s10 = smov 8  }
  0x24   :  { %60 = dma.hbm_to_vmem [thread:$0]  %s1113_s3, 1536, %s956_s12, [#allocation9], %s895_s1, %s895_s1, %s896_s10  }
  0x25   :  { %s897_s14 = smov [#allocation11]   ;;  %s898_s16 = smov [#allocation2]  }
  0x26   :  { %s78_s15 = sshll.u32 %s897_s14, 4  ;;  %s25_s17 = sshll.u32 %s898_s16, 4  ;;  %s79_s15 = int_to_ptr.vmem [resolvable:$true] %s78_s15  ;;  %s26_s17 = int_to_ptr.vmem [resolvable:$true] %s25_s17 }
  0x27   :  { %s751_s20 = scalar_lea.hbm %s1115_s5, 768 }
  0x28   :  { %p752_p2 = scmp.ne.s32.totalorder %s1115_s5, %s751_s20  ;;  %p755_p3 = scmp.lt.u32.totalorder %s751_s20, %s1115_s5 }
  0x2a   :  { %p757_p4 = pnand %p755_p3, %p752_p2 }
  0x2c   :  { %760 = shalt.err (!%p757_p4)
}
  0x2d   :  { %s761_s3 = scalar_lea.vmem %s79_s15, 768  ;;  %p766_p6 = scmp.lt.s32.totalorder %s79_s15, %s79_s15 }
  0x2e   :  { %p762_p5 = scmp.ne.s32.totalorder %s79_s15, %s761_s3  ;;  %p767_p7 = scmp.lt.s32.totalorder %s761_s3, %s761_s3 }
  0x30   :  { %p768_p8 = por %p767_p7, %p766_p6 }
  0x32   :  { %p769_p9 = pnand %p768_p8, %p762_p5 }
  0x34   :  { %772 = shalt.err (!%p769_p9)
}
  0x35   :  { %84 = dma.hbm_to_vmem [thread:$0]  %s1115_s5, 768, %s79_s15, [#allocation12], %s895_s1, %s895_s1, %s896_s10  }
  0x36   :  { %s773_s28 = scalar_lea.hbm %s1110_s0, 128 }
  0x37   :  { %p774_p10 = scmp.ne.s32.totalorder %s1110_s0, %s773_s28  ;;  %p777_p11 = scmp.lt.u32.totalorder %s773_s28, %s1110_s0 }
  0x39   :  { %p779_p12 = pnand %p777_p11, %p774_p10 }
  0x3b   :  { %782 = shalt.err (!%p779_p12)
}
  0x3c   :  { %s783_s14 = scalar_lea.vmem %s26_s17, 128  ;;  %p788_p0 = scmp.lt.s32.totalorder %s26_s17, %s26_s17 }
  0x3d   :  { %p784_p13 = scmp.ne.s32.totalorder %s26_s17, %s783_s14  ;;  %p789_p1 = scmp.lt.s32.totalorder %s783_s14, %s783_s14 }
  0x3f   :  { %p790_p2 = por %p789_p1, %p788_p0 }
  0x41   :  { %p791_p3 = pnand %p790_p2, %p784_p13 }
  0x43   :  { %794 = shalt.err (!%p791_p3)
}
  0x44   :  { %28 = dma.hbm_to_vmem [thread:$0]  %s1110_s0, 128, %s26_s17, [#allocation3]  }
  0x45   :  { %s899_s16 = smov [#allocation7]   ;;  %s900_s19 = smov [#allocation10]  }
  0x46   :  { %s45_s18 = sshll.u32 %s899_s16, 4  ;;  %s66_s20 = sshll.u32 %s900_s19, 4  ;;  %s46_s18 = int_to_ptr.vmem [resolvable:$true] %s45_s18  ;;  %s1017_s20 = int_to_ptr.vmem [resolvable:$true] %s66_s20 }
  0x47   :  { %s795_s23 = scalar_lea.hbm %s1112_s2, 128 }
  0x48   :  { %p796_p4 = scmp.ne.s32.totalorder %s1112_s2, %s795_s23  ;;  %p799_p5 = scmp.lt.u32.totalorder %s795_s23, %s1112_s2 }
  0x4a   :  { %p801_p6 = pnand %p799_p5, %p796_p4 }
  0x4c   :  { %804 = shalt.err (!%p801_p6)
}
  0x4d   :  { %s805_s0 = scalar_lea.vmem %s46_s18, 128  ;;  %p810_p8 = scmp.lt.s32.totalorder %s46_s18, %s46_s18 }
  0x4e   :  { %p806_p7 = scmp.ne.s32.totalorder %s46_s18, %s805_s0  ;;  %p811_p9 = scmp.lt.s32.totalorder %s805_s0, %s805_s0 }
  0x50   :  { %p812_p10 = por %p811_p9, %p810_p8 }
  0x52   :  { %p813_p11 = pnand %p812_p10, %p806_p7 }
  0x54   :  { %816 = shalt.err (!%p813_p11)
}
  0x55   :  { %48 = dma.hbm_to_vmem [thread:$0]  %s1112_s2, 128, %s46_s18, [#allocation6]  }
  0x56   :  { %s817_s29 = scalar_lea.hbm %s1114_s4, 768 }
  0x57   :  { %p818_p12 = scmp.ne.s32.totalorder %s1114_s4, %s817_s29  ;;  %p821_p13 = scmp.lt.u32.totalorder %s817_s29, %s1114_s4 }
  0x59   :  { %p823_p0 = pnand %p821_p13, %p818_p12 }
  0x5b   :  { %826 = shalt.err (!%p823_p0)
}
  0x5c   :  { %s827_s5 = scalar_lea.vmem %s1017_s20, 768  ;;  %p832_p2 = scmp.lt.s32.totalorder %s1017_s20, %s1017_s20 }
  0x5d   :  { %p828_p1 = scmp.ne.s32.totalorder %s1017_s20, %s827_s5  ;;  %p833_p3 = scmp.lt.s32.totalorder %s827_s5, %s827_s5 }
  0x5f   :  { %p834_p4 = por %p833_p3, %p832_p2 }
  0x61   :  { %p835_p5 = pnand %p834_p4, %p828_p1 }
  0x63   :  { %838 = shalt.err (!%p835_p5)
}
  0x64   :  { %72 = dma.hbm_to_vmem [thread:$0]  %s1114_s4, 768, %s1017_s20, [#allocation9], %s895_s1, %s895_s1, %s896_s10  }
  0x65   :  { %s901_s16 = smov [#allocation13]   ;;  %s839_s22 = scalar_lea.hbm %s1117_s7, 2048 }
  0x66   :  { %s92_s18 = sshll.u32 %s901_s16, 4  ;;  %p840_p6 = scmp.ne.s32.totalorder %s1117_s7, %s839_s22  ;;  %s93_s18 = int_to_ptr.vmem [resolvable:$true] %s92_s18 }
  0x67   :  { %p843_p7 = scmp.lt.u32.totalorder %s839_s22, %s1117_s7 }
  0x69   :  { %p845_p8 = pnand %p843_p7, %p840_p6 }
  0x6b   :  { %848 = shalt.err (!%p845_p8)
}
  0x6c   :  { %s849_s25 = scalar_lea.vmem %s93_s18, 2048  ;;  %p854_p10 = scmp.lt.s32.totalorder %s93_s18, %s93_s18 }
  0x6d   :  { %p850_p9 = scmp.ne.s32.totalorder %s93_s18, %s849_s25  ;;  %p855_p11 = scmp.lt.s32.totalorder %s849_s25, %s849_s25 }
  0x6f   :  { %p856_p12 = por %p855_p11, %p854_p10 }
  0x71   :  { %p857_p13 = pnand %p856_p12, %p850_p9 }
  0x73   :  { %860 = shalt.err (!%p857_p13)
}
  0x74   :  { %98 = dma.hbm_to_vmem [thread:$0]  %s1117_s7, 2048, %s93_s18, [#allocation12], %s895_s1, %s895_s1, %s896_s10  }
  0x75   :  { %883 = dma.done.wait [#allocation3], 128  }
  0x76   :  { %884 = vsyncadd [#allocation3], 4294967168 }
  0x77   :  { %885 = dma.done.wait [#allocation6], 256  }
  0x78   :  { %886 = vsyncadd [#allocation6], 4294967040 }
  0x79   :  { %887 = dma.done.wait [#allocation9], 2304  }
  0x7a   :  { %888 = vsyncadd [#allocation9], 4294964992 }
  0x7b   :  { %889 = dma.done.wait [#allocation12], 2816  }
  0x7c   :  { %890 = vsyncadd [#allocation12], 4294964480  ;;  %v902_v0 = vmov 0.0|0.0   ;;  %vm903_vm0 = vmmov 0   ;;  %v904_v1 = vmov 0.0   ;;  %v136_v2 = vld [vmem:[#allocation10] sm:$0xff] }
  0x7d   :  { %634 = vmatprep.subr.bf16.mxu1 %v902_v0  ;;  %554 = vmatprep.mubr.msk.f32.mxu1 %vm903_vm0, %v904_v1  ;;  %v137_v3 = vld [vmem:[#allocation10 + $0x8] sm:$0xff]  ;;  %v138_v4 = vld [vmem:[#allocation10 + $0x10] sm:$0xff]  ;;  %v139_v6 = vld [vmem:[#allocation10 + $0x18] sm:$0xff]  ;;  %vm142_vm1 = vcmask 392192   ;;  %vm216_vm2 = vcmask 785408   ;;  %s905_s17 = smov [#allocation14]  }
  0x7e   :  { %661 = vmatprep.subr.bf16.mxu0 %v902_v0  ;;  %596 = vmatprep.mubr.msk.f32.mxu0 %vm903_vm0, %v904_v1  ;;  %v635_v5 = vpack.c.bf16 %v137_v3, %v136_v2  ;;  %v638_v7 = vpack.c.bf16 %v139_v6, %v138_v4  ;;  %v140_v8 = vld [vmem:[#allocation10 + $0x20] sm:$0xff]  ;;  %v141_v9 = vld [vmem:[#allocation10 + $0x28] sm:$0xff]  ;;  %v291_v10 = vld [vmem:[#allocation11] sm:$0xff]  ;;  %s481_s26 = sshll.u32 %s905_s17, 4  ;;  %s482_s26 = int_to_ptr.vmem [resolvable:$true] %s481_s26 }
  0x7f   :  { %v292_v11 = vld [vmem:[#allocation11 + $0x8] sm:$0xff]  ;;  %v293_v13 = vld [vmem:[#allocation11 + $0x10] sm:$0xff]  ;;  %v294_v14 = vld [vmem:[#allocation11 + $0x18] sm:$0xff]  ;;  %v641_v15 = vpack.c.bf16 %v141_v9, %v140_v8  ;;  %s861_s27 = scalar_lea.vmem %s482_s26, 128  ;;  %p866_p1 = scmp.lt.s32.totalorder %s482_s26, %s482_s26 }
  0x80   :  { %636 = vmatpush3.bf16.msra.mxu1 %v635_v5  ;;  %v662_v12 = vpack.c.bf16 %v292_v11, %v291_v10  ;;  %v123_v16 = vld [vmem:[#allocation8] sm:$0xff]  ;;  %v124_v17 = vld [vmem:[#allocation8 + $0x8] sm:$0xff]  ;;  %v665_v18 = vpack.c.bf16 %v294_v14, %v293_v13  ;;  %v295_v19 = vld [vmem:[#allocation11 + $0x20] sm:$0xff]  ;;  %p862_p0 = scmp.ne.s32.totalorder %s482_s26, %s861_s27  ;;  %p867_p2 = scmp.lt.s32.totalorder %s861_s27, %s861_s27 }
  0x81   :  { %637 = vmatprep.subr.bf16.mxu1 %v902_v0  ;;  %v296_v20 = vld [vmem:[#allocation11 + $0x28] sm:$0xff]  ;;  %v135_v21 = vld [vmem:[#allocation5] sm:$0xff]  ;;  %v644_v22 = vpack.c.bf16 %v124_v17, %v123_v16  ;;  %v127_v27 = vld [vmem:[#allocation8 + $0x20] sm:$0xff] }
  0x82   :  { %663 = vmatpush3.bf16.msra.mxu0 %v662_v12  ;;  %v125_v23 = vld [vmem:[#allocation8 + $0x10] sm:$0xff]  ;;  %v126_v24 = vld [vmem:[#allocation8 + $0x18] sm:$0xff]  ;;  %v668_v25 = vpack.c.bf16 %v296_v20, %v295_v19  ;;  %v128_v28 = vld [vmem:[#allocation8 + $0x28] sm:$0xff]  ;;  %p868_p3 = por %p867_p2, %p866_p1 }
  0x83   :  { %664 = vmatprep.subr.bf16.mxu0 %v902_v0  ;;  %v647_v26 = vpack.c.bf16 %v126_v24, %v125_v23  ;;  %v290_v29 = vld [vmem:[#allocation7] sm:$0xff]  ;;  %v650_v30 = vpack.c.bf16 %v128_v28, %v127_v27  ;;  %v129_v31 = vld [vmem:[#allocation8 + $0x30] sm:$0xff]  ;;  %v131_v34 = vld [vmem:[#allocation8 + $0x40] sm:$0xff] }
  0x84   :  { %639 = vmatpush3.bf16.msra.mxu1 %v638_v7  ;;  %v130_v32 = vld [vmem:[#allocation8 + $0x38] sm:$0xff]  ;;  %v132_v35 = vld [vmem:[#allocation8 + $0x48] sm:$0xff]  ;;  %v133_v37 = vld [vmem:[#allocation8 + $0x50] sm:$0xff]  ;;  %p869_p4 = pnand %p868_p3, %p862_p0 }
  0x85   :  { %640 = vmatprep.subr.bf16.mxu1 %v902_v0  ;;  %v653_v33 = vpack.c.bf16 %v130_v32, %v129_v31  ;;  %v656_v36 = vpack.c.bf16 %v132_v35, %v131_v34  ;;  %v134_v38 = vld [vmem:[#allocation8 + $0x58] sm:$0xff]  ;;  %v122_v40 = vld [vmem:[#allocation2] sm:$0xff]  ;;  %v381_v41 = vld [vmem:[#allocation13] sm:$0xff] }
  0x86   :  { %666 = vmatpush3.bf16.msra.mxu0 %v665_v18  ;;  %v659_v39 = vpack.c.bf16 %v134_v38, %v133_v37  ;;  %v382_v42 = vld [vmem:[#allocation13 + $0x8] sm:$0xff]  ;;  %v383_v43 = vld [vmem:[#allocation13 + $0x10] sm:$0xff]  ;;  %v384_v45 = vld [vmem:[#allocation13 + $0x18] sm:$0xff] }
  0x87   :  { %667 = vmatprep.subr.bf16.mxu0 %v902_v0  ;;  %v671_v44 = vpack.c.bf16 %v382_v42, %v381_v41  ;;  %v674_v46 = vpack.c.bf16 %v384_v45, %v383_v43  ;;  %v385_v47 = vld [vmem:[#allocation13 + $0x20] sm:$0xff]  ;;  %v386_v48 = vld [vmem:[#allocation13 + $0x28] sm:$0xff]  ;;  %v387_v50 = vld [vmem:[#allocation13 + $0x30] sm:$0xff] }
  0x88   :  { %642 = vmatpush3.bf16.msra.mxu1 %v641_v15  ;;  %v677_v49 = vpack.c.bf16 %v386_v48, %v385_v47  ;;  %v388_v51 = vld [vmem:[#allocation13 + $0x38] sm:$0xff]  ;;  %v389_v53 = vld [vmem:[#allocation13 + $0x40] sm:$0xff]  ;;  %v390_v54 = vld [vmem:[#allocation13 + $0x48] sm:$0xff] }
  0x89   :  { %643 = vmatprep.subr.bf16.mxu1 %v902_v0  ;;  %v680_v52 = vpack.c.bf16 %v388_v51, %v387_v50  ;;  %v683_v55 = vpack.c.bf16 %v390_v54, %v389_v53  ;;  %v391_v56 = vld [vmem:[#allocation13 + $0x50] sm:$0xff]  ;;  %v392_v57 = vld [vmem:[#allocation13 + $0x58] sm:$0xff]  ;;  %v393_v59 = vld [vmem:[#allocation13 + $0x60] sm:$0xff] }
  0x8a   :  { %669 = vmatpush3.bf16.msra.mxu0 %v668_v25  ;;  %v686_v58 = vpack.c.bf16 %v392_v57, %v391_v56  ;;  %v394_v60 = vld [vmem:[#allocation13 + $0x68] sm:$0xff]  ;;  %v395_v62 = vld [vmem:[#allocation13 + $0x70] sm:$0xff]  ;;  %v396_v63 = vld [vmem:[#allocation13 + $0x78] sm:$0xff] }
  0x8b   :  { %555 = vmatmul.mubr.msk.f32.vlgmr.msra.gmra.mrb[0].mxu1 %vm142_vm1, %v135_v21  ;;  %670 = vmatprep.subr.bf16.mxu0 %v902_v0  ;;  %v689_v61 = vpack.c.bf16 %v394_v60, %v393_v59  ;;  %v496_v9 = vld [vmem:[%s1116_s6] ss:$0 sm:$0xff] }
  0x8c   :  { %645 = vmatpush3.bf16.msra.mxu1 %v644_v22  ;;  %581 = vmatprep.mubr.msk.f32.mxu1 %vm903_vm0, %v904_v1 }
  0x8d   :  { %646 = vmatprep.subr.bf16.mxu1 %v902_v0  ;;  %597 = vmatmul.mubr.msk.f32.vlgmr.msra.gmra.mrb[0].mxu0 %vm142_vm1, %v290_v29 }
  0x8e   :  { %631 = vmatprep.mubr.msk.f32.mxu0 %vm903_vm0, %v904_v1  ;;  %672 = vmatpush3.bf16.msra.mxu0 %v671_v44  ;;  %v692_v1 = vpack.c.bf16 %v396_v63, %v395_v62 }
  0x8f   :  { %673 = vmatprep.subr.bf16.mxu0 %v902_v0 }
  0x90   :  { %648 = vmatpush3.bf16.msra.mxu1 %v647_v26 }
  0x91   :  { %649 = vmatprep.subr.bf16.mxu1 %v902_v0 }
  0x92   :  { %675 = vmatpush3.bf16.msra.mxu0 %v674_v46 }
  0x93   :  { %676 = vmatprep.subr.bf16.mxu0 %v902_v0 }
  0x94   :  { %651 = vmatpush3.bf16.msra.mxu1 %v650_v30 }
  0x95   :  { %652 = vmatprep.subr.bf16.mxu1 %v902_v0 }
  0x96   :  { %678 = vmatpush3.bf16.msra.mxu0 %v677_v49 }
  0x97   :  { %679 = vmatprep.subr.bf16.mxu0 %v902_v0 }
  0x98   :  { %654 = vmatpush3.bf16.msra.mxu1 %v653_v33 }
  0x99   :  { %655 = vmatprep.subr.bf16.mxu1 %v902_v0 }
  0x9a   :  { %681 = vmatpush3.bf16.msra.mxu0 %v680_v52 }
  0x9b   :  { %682 = vmatprep.subr.bf16.mxu0 %v902_v0 }
  0x9c   :  { %657 = vmatpush3.bf16.msra.mxu1 %v656_v36 }
  0x9d   :  { %658 = vmatprep.subr.bf16.mxu1 %v902_v0 }
  0x9e   :  { %684 = vmatpush3.bf16.msra.mxu0 %v683_v55 }
  0x9f   :  { %685 = vmatprep.subr.bf16.mxu0 %v902_v0 }
  0xa0   :  { %660 = vmatpush3.bf16.msra.mxu1 %v659_v39 }
  0xa2   :  { %687 = vmatpush3.bf16.msra.mxu0 %v686_v58 }
  0xa3   :  { %582 = vmatmul.mubr.msk.f32.vlgmr.msra.gmra.mrb[2].mxu1 %vm216_vm2, %v122_v40  ;;  %688 = vmatprep.subr.bf16.mxu0 %v902_v0 }
  0xa6   :  { %690 = vmatpush3.bf16.msra.mxu0 %v689_v61 }
  0xa7   :  { %691 = vmatprep.subr.bf16.mxu0 %v902_v0  ;;  %v497_v0 = vld [vmem:[%s1118_s8] ss:$0 sm:$0xff] }
  0xaa   :  { %693 = vmatpush3.bf16.msra.mxu0 %v692_v1 }
 0x15e   :  { %v212_v2 = vpop.f32.mrb[0].mxu1 }
 0x15f   :  { %v556_v3 = vpop.f32.mrb[1].mxu1 }
 0x160   :  { %v366_v4 = vpop.f32.mrb[0].mxu0 }
 0x161   :  { %v598_v5 = vpop.f32.mrb[1].mxu0 }
 0x176   :  { %v286_v6 = vpop.f32.mrb[2].mxu1 }
 0x177   :  { %v287_v7 = vadd.f32 %v286_v6, %v212_v2  ;;  %v583_v8 = vpop.f32.mrb[3].mxu1 }
 0x179   :  { %v370_v10 = vadd.f32 %v366_v4, %v287_v7 }
 0x17b   :  { %v378_v11 = vadd.f32 %v496_v9, %v370_v10 }
 0x17d   :  { %v379_v12 = vmul.f32 %v378_v11, %v378_v11 }
 0x17f   :  { %v380_v13 = vmul.f32 %v379_v12, %v378_v11 }
 0x181   :  { %632 = vmatmul.mubr.f32.vlgmr.msra.gmra.mrb[2].mxu0 %v380_v13 }
 0x254   :  { %v470_v14 = vpop.f32.mrb[2].mxu0 }
 0x255   :  { %v471_v15 = vadd.f32 %v497_v0, %v470_v14  ;;  %v633_v16 = vpop.f32.mrb[3].mxu0 }
 0x257   :  { %474 = vst [vmem:[#allocation14] sm:$0xff] %v471_v15 }
 0x258   :  { %872 = shalt.err (!%p869_p4)
}
 0x259   :  { %s873_s29 = scalar_lea.hbm %s1119_s9, 128 }
 0x25a   :  { %p874_p5 = scmp.ne.s32.totalorder %s1119_s9, %s873_s29  ;;  %p877_p6 = scmp.lt.u32.totalorder %s873_s29, %s1119_s9 }
 0x25c   :  { %p879_p7 = pnand %p877_p6, %p874_p5 }
 0x25e   :  { %882 = shalt.err (!%p879_p7)
}
 0x25f   :  { %484 = dma.vmem_to_hbm [thread:$0]  %s482_s26, 128, %s1119_s9, [#allocation4]  }
 0x260   :  { %891 = dma.done.wait [#allocation4], 128  }
 0x261   :  { %892 = vsyncadd [#allocation4], 4294967168 }
 0x262   :  { %488 = vsyncpa [#allocation3], 1 }
 0x263   :  { %489 = vsyncpa [#allocation6], 1 }
 0x264   :  { %490 = vsyncpa [#allocation9], 1 }
 0x265   :  { %491 = vsyncpa [#allocation12], 1 }
 0x266   :  { %492 = vsyncpa [#allocation4], 1 }

</bundles_post_ra>
